<compile_context>
chip_gen: v6e
topology: v6e:2x2x1
jax: 0.10.0
libtpu: 0.0.40
codegen_flags: <defaults>
</compile_context>

<pallas_src>
import functools

import jax
import jax.numpy as jnp
from jax.experimental import pallas as pl
from jax.experimental.pallas import tpu as pltpu


def _dropconnect_kernel(u_ref, x_ref, o_ref, *, keep_prob):
    # u_ref: (TR, 1) float32 uniforms; x_ref/o_ref: (TR, HW) in x.dtype.
    # Mask math in f32 so low-precision inputs do not bias the keep probability
    # or the 1/keep_prob rescale (VPU has huge slack in this mem-bound kernel).
    binary = jnp.floor(keep_prob + u_ref[...])                # 0.0 / 1.0 per row
    scale = binary * (1.0 / keep_prob)                        # (TR, 1) f32
    o_ref[...] = (x_ref[...].astype(jnp.float32) * scale).astype(o_ref.dtype)


def _pick_row_tile(bc, row_bytes, target_bytes=2 * 1024 * 1024):
    """Rows per tile: ~2 MiB per x/out tile, multiple of 8 (sublane), <= bc."""
    if bc <= 8:
        return bc
    tr = max(8, target_bytes // max(row_bytes, 1))
    tr = min(tr, bc)
    return max((tr // 8) * 8, 8)


@functools.partial(jax.jit, static_argnames=("p",))
def _drop_connect_impl(x, u, p):
    B, C, H, W = x.shape
    BC, HW = B * C, H * W
    keep_prob = 1.0 - p
    x2 = x.reshape(BC, HW)

    tr = _pick_row_tile(BC, HW * x.dtype.itemsize)
    grid = (pl.cdiv(BC, tr),)
    # TODO(synk): for tiny feature maps (H*W < 128, e.g. 7x7/14x14) regroup rows
    # into a lane-dense [N/L, L>=128] slab (expanding the mask per chunk) to
    # avoid masked partial stores; H*W here is a multiple of 128 already.

    out2 = pl.pallas_call(
        functools.partial(_dropconnect_kernel, keep_prob=keep_prob),
        out_shape=jax.ShapeDtypeStruct((BC, HW), x.dtype),
        grid_spec=pl.GridSpec(
            grid=grid,
            in_specs=[
                pl.BlockSpec((tr, 1), lambda i: (i, 0)),    # per-row uniforms
                pl.BlockSpec((tr, HW), lambda i: (i, 0)),   # x row tile
            ],
            out_specs=pl.BlockSpec((tr, HW), lambda i: (i, 0)),
        ),
        # Output reuses x2's HBM buffer; callers that donate x avoid a second
        # full-size activation allocation (XLA copies when x is still live).
        input_output_aliases={1: 0},
        cost_estimate=pl.CostEstimate(
            flops=2 * BC * HW,
            transcendentals=0,
            bytes_accessed=2 * BC * HW * x.dtype.itemsize + BC * 4,
        ),
        compiler_params=pltpu.CompilerParams(
            # Row tiles are independent -> shard the grid across both
            # TensorCores on v7x; neutral on v5e/v6e.
            dimension_semantics=("parallel",),
        ),
    )(u, x2)
    return out2.reshape(B, C, H, W)


def drop_connect(x, key, p):
    """x: [B, C, H, W]; returns (out, u) with out same shape/dtype as x."""
    assert 0.0 <= p < 1.0, "DropConnect requires 0 <= p < 1"
    B, C, _, _ = x.shape
    # Per-(b, c) uniform draws in float32 regardless of x.dtype (unbiased mask).
    # TODO(synk): in production generate these in-kernel with pltpu.prng_seed +
    # pltpu.prng_random_bits to skip this tiny extra launch; kept as an explicit
    # input here so the mask is observable for the reference check.
    u = jax.random.uniform(key, (B * C, 1), dtype=jnp.float32)
    return _drop_connect_impl(x, u, p), u


if __name__ == "__main__":
    key = jax.random.PRNGKey(0)
    kx, kmask = jax.random.split(key)

    B, C, H, W = 2, 4, 16, 16
    p = 0.3
    x = jax.random.normal(kx, (B, C, H, W), dtype=jnp.float32)

    out, u = drop_connect(x, kmask, p)
    out = jax.block_until_ready(out)

    # Reference check (pure JAX, same random draws)
    keep_prob = 1.0 - p
    binary = jnp.floor(keep_prob + u).reshape(B, C, 1, 1)
    ref = x / keep_prob * binary
    assert out.shape == x.shape and out.dtype == x.dtype
    assert jnp.allclose(out, ref, rtol=1e-6, atol=1e-6), "mismatch vs reference"

    print("KERNEL_OK")
</pallas_src>

<mosaic_0001>
module attributes {stable_mosaic.version = 11 : i64} {
  func.func @_dropconnect_kernel(%arg0: i32, %arg1: memref<8x1xf32, #tpu.memory_space<vmem>>, %arg2: memref<8x256xf32, #tpu.memory_space<vmem>>, %arg3: memref<8x256xf32, #tpu.memory_space<vmem>>) attributes {dimension_semantics = [#tpu.dimension_semantics<parallel>], iteration_bounds = array<i64: 1>, scalar_prefetch = 0 : i64, scratch_operands = 0 : i64, tpu.core_type = #tpu.core_type<tc>, window_params = [{transform_indices = @transform_0, window_bounds = array<i64: 8, 1>}, {transform_indices = @transform_1, window_bounds = array<i64: 8, 256>}, {transform_indices = @transform_2, window_bounds = array<i64: 8, 256>}]} {
    %c0 = arith.constant 0 : index
    %c0_0 = arith.constant 0 : index
    %0 = vector.load %arg1[%c0, %c0_0] : memref<8x1xf32, #tpu.memory_space<vmem>>, vector<8x1xf32>
    %cst = arith.constant 0.699999988 : f32
    %1 = vector.broadcast %cst : f32 to vector<8x1xf32>
    %2 = arith.addf %1, %0 : vector<8x1xf32>
    %3 = math.floor %2 : vector<8x1xf32>
    %cst_1 = arith.constant 1.42857146 : f32
    %4 = vector.broadcast %cst_1 : f32 to vector<8x1xf32>
    %5 = arith.mulf %3, %4 : vector<8x1xf32>
    %c0_2 = arith.constant 0 : index
    %c0_3 = arith.constant 0 : index
    %6 = vector.load %arg2[%c0_2, %c0_3] : memref<8x256xf32, #tpu.memory_space<vmem>>, vector<8x256xf32>
    %7 = vector.broadcast %5 : vector<8x1xf32> to vector<8x256xf32>
    %8 = arith.mulf %6, %7 : vector<8x256xf32>
    %c0_4 = arith.constant 0 : index
    %c0_5 = arith.constant 0 : index
    %9 = vector.load %arg3[%c0_4, %c0_5] : memref<8x256xf32, #tpu.memory_space<vmem>>, vector<8x256xf32>
    tpu.vector_store %arg3[%c0_4, %c0_5], %8 {strides = array<i32>} : memref<8x256xf32, #tpu.memory_space<vmem>>, vector<8x256xf32>,
    return
  }
  func.func @transform_0(%arg0: i32) -> (i32, i32) {
    %c0_i32 = arith.constant 0 : i32
    %c0_i32_0 = arith.constant 0 : i32
    return %arg0, %c0_i32 : i32, i32
  }
  func.func @transform_1(%arg0: i32) -> (i32, i32) {
    %c0_i32 = arith.constant 0 : i32
    %c0_i32_0 = arith.constant 0 : i32
    return %arg0, %c0_i32 : i32, i32
  }
  func.func @transform_2(%arg0: i32) -> (i32, i32) {
    %c0_i32 = arith.constant 0 : i32
    %c0_i32_0 = arith.constant 0 : i32
    return %arg0, %c0_i32 : i32, i32
  }
}

</mosaic_0001>

<bundles_post_ra>
// kernel: _drop_connect_impl.1
= control target key start
LH: loop header
LB: loop body
LE: loop exit
PB: predicated region body
PF: predicated region fallthrough
CT: control target
= control target key end

     0   :  { %v32_v0 = vmov 0   ;;  %s63_s0 = inlined_call_operand.vmem [shape: f32[8,1], index: 0, kind: input, shape index: {}]   ;;  %s64_s1 = inlined_call_operand.vmem [shape: f32[8,256], index: 1, kind: input, shape index: {}, may-alias: {1,2}]   ;;  %s65_s2 = inlined_call_operand.vmem [shape: f32[8,256], index: 2, kind: output, shape index: {}, may-alias: {1,2}]  }
   0x1   :  { %31 = vset.pattern.permute.xlu0 %v32_v0  ;;  %v11_v1 = vld [vmem:[%s63_s0] sm:$0xff]  ;;  %v16_v6 = vld [vmem:[%s64_s1 + $0x8] sm:$0xff] }
   0x2   :  { %v12_v2 = vadd.f32 0.7, %v11_v1  ;;  %v15_v5 = vld [vmem:[%s64_s1] sm:$0xff] }
   0x4   :  { %v13_v3 = vfloor.f32 %v12_v2 }
   0x6   :  { %v14_v4 = vmul.f32 1.4285715, %v13_v3 }
   0x8   :  { %19 = vperm.xlu0 %31, %v14_v4  }
  0x83   :  { %v20_v7 = vpop.permute.xlu0 %19 }
  0x84   :  { %v22_v8 = vmul.f32 %v20_v7, %v15_v5  ;;  %v23_v9 = vmul.f32 %v20_v7, %v16_v6 }
  0x86   :  { %24 = vst [vmem:[%s65_s2] sm:$0xff] %v22_v8  ;;  %25 = vst [vmem:[%s65_s2 + $0x8] sm:$0xff] %v23_v9 }

</bundles_post_ra>
